<compile_context>
chip_gen: v6e
topology: v6e:2x2x1
jax: 0.10.0
libtpu: 0.0.40
codegen_flags: <defaults>
</compile_context>

<pallas_src>
import functools

import jax
import jax.numpy as jnp
from jax import lax
from jax.experimental import pallas as pl
from jax.experimental.pallas import tpu as pltpu

HPAD = 8            # head-axis padding for the batched attention-logit matmuls
NEG_INF = -1e30     # f32 mask sentinel (softmax path stays in f32)
MAX_DST_TILE = 256  # destination-row tile for large graphs (demo fits in one tile)


def _full_spec(shape):
    """BlockSpec covering the whole array (block index 0 along every dim)."""
    return pl.BlockSpec(shape, lambda *_: (0,) * len(shape))


# ---------------------------------------------------------------------------
# Kernel 1: fused lin_sent + lin_word (Linear + ReLU, eval mode)
# ---------------------------------------------------------------------------

def _dual_linear_relu_kernel(xs_ref, ws_ref, bs_ref, xw_ref, ww_ref, bw_ref,
                             os_ref, ow_ref):
    ys = jnp.dot(xs_ref[...].astype(jnp.bfloat16), ws_ref[...],
                 preferred_element_type=jnp.float32) + bs_ref[...]
    os_ref[...] = jnp.maximum(ys, 0.0)
    yw = jnp.dot(xw_ref[...].astype(jnp.bfloat16), ww_ref[...],
                 preferred_element_type=jnp.float32) + bw_ref[...]
    ow_ref[...] = jnp.maximum(yw, 0.0)


def dual_linear_relu(xs, ws, bs, xw, ww, bw):
    ns, ds = xs.shape
    nw, dw = xw.shape
    return pl.pallas_call(
        _dual_linear_relu_kernel,
        out_shape=(jax.ShapeDtypeStruct((ns, ds), jnp.float32),
                   jax.ShapeDtypeStruct((nw, dw), jnp.float32)),
        grid=(1,),
        in_specs=[_full_spec((ns, ds)), _full_spec(ws.shape), _full_spec(bs.shape),
                  _full_spec((nw, dw)), _full_spec(ww.shape), _full_spec(bw.shape)],
        out_specs=(_full_spec((ns, ds)), _full_spec((nw, dw))),
        compiler_params=pltpu.CompilerParams(
            dimension_semantics=("arbitrary",),
            vmem_limit_bytes=64 * 1024 * 1024),
    )(xs, ws, bs, xw, ww, bw)


# ---------------------------------------------------------------------------
# Kernel 2: two GATConv relations sharing a destination node set, summed in VMEM
# ---------------------------------------------------------------------------

def _dual_gat_kernel(*refs, heads, ch, share_a, share_b, share_ab):
    """GAT(rel_A) + GAT(rel_B) for one destination-row tile (PyG GATConv semantics:
    shared src/dst projection, LeakyReLU(0.2) on att_dst[d]+att_src[s], masked softmax
    over incoming edges per destination, concat heads, add bias; aggr='sum')."""
    it = iter(refs)
    xd_ref = next(it)
    xoA_ref = None if share_a else next(it)
    if share_b:
        xoB_ref = None
    elif share_ab:
        xoB_ref = xoA_ref                      # both relations read the same src array
    else:
        xoB_ref = next(it)
    wA_ref = next(it); asA_ref = next(it); adA_ref = next(it)
    bA_ref = next(it); mA_ref = next(it)
    wB_ref = next(it); asB_ref = next(it); adB_ref = next(it)
    bB_ref = next(it); mB_ref = next(it)
    o_ref = next(it)

    t = xd_ref.shape[0]
    hc = heads * ch
    xd = xd_ref[...].astype(jnp.bfloat16)                              # [T, Din]
    col = lax.broadcasted_iota(jnp.int32, (1, hc), 1)                  # head-column ids

    def one_relation(w_ref, as_ref, ad_ref, b_ref, m_ref, xo_ref, share):
        w = w_ref[...]                                                 # bf16 [Din, HC]
        xd_proj = jnp.dot(xd, w, preferred_element_type=jnp.float32)   # [T, HC] f32
        xd_b = xd_proj.astype(jnp.bfloat16)
        if share:                                                      # src nodes == dst nodes
            xs_b = xd_b
        else:
            xs_b = jnp.dot(xo_ref[...].astype(jnp.bfloat16), w,
                           preferred_element_type=jnp.float32).astype(jnp.bfloat16)

        # All-heads attention logits via two block-diagonal MXU matmuls.
        e_src = lax.dot_general(as_ref[...], xs_b, (((1,), (1,)), ((), ())),
                                preferred_element_type=jnp.float32)    # [HPAD, Ns]
        e_dst = jnp.dot(xd_b, ad_ref[...],
                        preferred_element_type=jnp.float32)            # [T, HPAD]

        mask = m_ref[...]                                              # [T, Ns] f32
        neg_bias = jnp.where(mask > 0, 0.0, NEG_INF)                   # hoisted out of head loop

        acc = jnp.zeros((t, hc), jnp.float32)
        for h in range(heads):                                         # static unroll
            s = e_dst[:, h:h + 1] + e_src[h:h + 1, :]                  # [T, Ns]
            s = jnp.where(s > 0, s, 0.2 * s) + neg_bias                # LeakyReLU(0.2) + mask
            mx = jnp.max(s, axis=1, keepdims=True)
            p = jnp.exp(s - mx) * mask
            denom = jnp.sum(p, axis=1, keepdims=True)
            inv = pl.reciprocal(jnp.where(denom > 0, denom, 1.0), approx=True)
            attn = (p * inv).astype(jnp.bfloat16)                      # zero-in-degree rows -> 0
            if heads == 1:
                xs_h = xs_b
            else:
                sel = (col >= h * ch) & (col < (h + 1) * ch)
                xs_h = jnp.where(sel, xs_b, jnp.zeros_like(xs_b))      # lane-dense head select
            acc = acc + jnp.dot(attn, xs_h, preferred_element_type=jnp.float32)
        return acc + b_ref[...]

    out = one_relation(wA_ref, asA_ref, adA_ref, bA_ref, mA_ref, xoA_ref, share_a)
    out = out + one_relation(wB_ref, asB_ref, adB_ref, bB_ref, mB_ref, xoB_ref, share_b)
    o_ref[...] = out                           # single lane-dense [T, heads*ch] store


def dual_gat_conv(x_dst, rel_a, rel_b, heads, ch):
    """rel_* = (x_src, (W, A_src, A_dst, bias), mask, src_is_dst)."""
    nd, din = x_dst.shape
    hc = heads * ch
    tile = nd if nd <= MAX_DST_TILE else MAX_DST_TILE
    grid_n = pl.cdiv(nd, tile)

    xsA, pA, mA, srcA_is_dst = rel_a
    xsB, pB, mB, srcB_is_dst = rel_b
    share_a = srcA_is_dst and grid_n == 1      # reuse dst projection (and skip src DMA)
    share_b = srcB_is_dst and grid_n == 1
    share_ab = (not share_a) and (not share_b) and (xsA is xsB)

    args = [x_dst]
    in_specs = [pl.BlockSpec((tile, din), lambda i: (i, 0))]
    if not share_a:
        args.append(xsA)
        in_specs.append(_full_spec(xsA.shape))
    if not (share_b or share_ab):
        args.append(xsB)
        in_specs.append(_full_spec(xsB.shape))
    for params, mask in ((pA, mA), (pB, mB)):
        w, asrc, adst, bias = params
        args += [w, asrc, adst, bias, mask]
        in_specs += [_full_spec(w.shape), _full_spec(asrc.shape), _full_spec(adst.shape),
                     _full_spec(bias.shape),
                     pl.BlockSpec((tile, mask.shape[1]), lambda i: (i, 0))]

    kernel = functools.partial(_dual_gat_kernel, heads=heads, ch=ch,
                               share_a=share_a, share_b=share_b, share_ab=share_ab)
    return pl.pallas_call(
        kernel,
        out_shape=jax.ShapeDtypeStruct((nd, hc), jnp.float32),
        grid=(grid_n,),
        in_specs=in_specs,
        out_specs=pl.BlockSpec((tile, hc), lambda i: (i, 0)),
        compiler_params=pltpu.CompilerParams(
            dimension_semantics=("parallel",),
            vmem_limit_bytes=64 * 1024 * 1024),
    )(*args)


# ---------------------------------------------------------------------------
# Host-side parameter prep (block-diagonal attention matrices, channel padding)
# ---------------------------------------------------------------------------

def _prep_gat_params(w, att_src, att_dst, bias, heads, ch, ch_pad):
    """Returns (W [Din, heads*ch_pad] bf16,
                A_src [HPAD, heads*ch_pad] bf16 block-diagonal,
                A_dst [heads*ch_pad, HPAD] bf16 block-diagonal,
                bias  [1, heads*ch_pad] f32).
    Channels padded ch -> ch_pad with zeros (lane-dense conv2 output); padded
    channels stay exactly zero end-to-end and are sliced off in the wrapper."""
    din = w.shape[0]
    hcp = heads * ch_pad
    w_p = jnp.zeros((din, hcp), jnp.float32)
    a_s = jnp.zeros((HPAD, hcp), jnp.float32)
    a_d = jnp.zeros((hcp, HPAD), jnp.float32)
    b_p = jnp.zeros((1, hcp), jnp.float32)
    for h in range(heads):
        c0 = h * ch_pad
        w_p = w_p.at[:, c0:c0 + ch].set(w[:, h * ch:(h + 1) * ch])
        a_s = a_s.at[h, c0:c0 + ch].set(att_src[h])
        a_d = a_d.at[c0:c0 + ch, h].set(att_dst[h])
        b_p = b_p.at[0, c0:c0 + ch].set(bias[h * ch:(h + 1) * ch])
    return (w_p.astype(jnp.bfloat16), a_s.astype(jnp.bfloat16),
            a_d.astype(jnp.bfloat16), b_p)


# ---------------------------------------------------------------------------
# Model (deterministic synthetic parameters)
# ---------------------------------------------------------------------------

class RelHetGraphPallas:
    RELS = ('similarity', 'pro_ant', 'in', 'has')

    def __init__(self, hidden_size, out_size, num_heads,
                 sentence_in_size=128, word_in_size=128, key=None):
        # PyTorch defaults use 768 == 768; the shared-lin GATConv requires equal src/dst dims.
        assert sentence_in_size == word_in_size
        self.hidden_size = hidden_size
        self.out_size = out_size
        self.num_heads = num_heads
        self.out_pad = max(128, -(-out_size // 128) * 128)   # lane-dense conv2 output width

        keys = iter(jax.random.split(key, 64))

        def init(shape, scale=0.1):
            return scale * jax.random.normal(next(keys), shape, dtype=jnp.float32)

        din = sentence_in_size
        # lin_sent / lin_word (weights pre-cast to bf16 for the MXU; bias stays f32)
        self.ws = init((din, din)).astype(jnp.bfloat16)
        self.bs = init((1, din))
        self.ww = init((din, din)).astype(jnp.bfloat16)
        self.bw = init((1, din))

        hc1 = hidden_size * num_heads
        # conv1: GATConv(din, hidden, heads=num_heads), concat=True
        self.conv1 = {r: _prep_gat_params(init((din, hc1)),
                                          init((num_heads, hidden_size)),
                                          init((num_heads, hidden_size)),
                                          init((hc1,)),
                                          num_heads, hidden_size, hidden_size)
                      for r in self.RELS}
        # conv2: GATConv(hidden*heads, out_size, heads=1); channels padded to out_pad.
        self.conv2 = {r: _prep_gat_params(init((hc1, out_size)),
                                          init((1, out_size)),
                                          init((1, out_size)),
                                          init((out_size,)),
                                          1, out_size, self.out_pad)
                      for r in self.RELS}

    def forward(self, masks, sentence_feat, word_feat):
        h_sent, h_word = dual_linear_relu(sentence_feat, self.ws, self.bs,
                                          word_feat, self.ww, self.bw)
        H, C1 = self.num_heads, self.hidden_size

        # ---- conv1 (HeteroConv, aggr='sum'): one fused kernel per destination type ----
        h_sent1 = dual_gat_conv(
            h_sent,
            (h_sent, self.conv1['similarity'], masks['similarity'], True),
            (h_word, self.conv1['in'],         masks['in'],         False),
            H, C1)
        h_word1 = dual_gat_conv(
            h_word,
            (h_sent, self.conv1['pro_ant'], masks['pro_ant'], False),
            (h_sent, self.conv1['has'],     masks['has'],     False),
            H, C1)
        # feat_drop is identity in eval mode; flatten(1) is a no-op ([N, heads*hidden]).

        # ---- conv2 (heads=1). forward() only returns h['sentence'], so only the two
        #      sentence-destination relations contribute to the result. ----
        out_pad = dual_gat_conv(
            h_sent1,
            (h_sent1, self.conv2['similarity'], masks['similarity'], True),
            (h_word1, self.conv2['in'],         masks['in'],         False),
            1, self.out_pad)
        return out_pad[:, :self.out_size]


# ---------------------------------------------------------------------------
# Demo
# ---------------------------------------------------------------------------

def _make_mask(key, n_dst, n_src, n_edges):
    ks, kd = jax.random.split(key)
    src = jax.random.randint(ks, (n_edges,), 0, n_src)
    dst = jax.random.randint(kd, (n_edges,), 0, n_dst)
    return jnp.zeros((n_dst, n_src), jnp.float32).at[dst, src].set(1.0)


if __name__ == "__main__":
    key = jax.random.PRNGKey(0)
    n_sent, n_word = 16, 24
    sent_in = word_in = 128
    hidden, heads, out_size = 32, 4, 16

    kf1, kf2, ke1, ke2, ke3, ke4, kp = jax.random.split(key, 7)
    sentence_feat = jax.random.normal(kf1, (n_sent, sent_in), dtype=jnp.float32)
    word_feat = jax.random.normal(kf2, (n_word, word_in), dtype=jnp.float32)

    masks = {
        'similarity': _make_mask(ke1, n_sent, n_sent, 48),   # sentence -> sentence
        'pro_ant':    _make_mask(ke2, n_word, n_sent, 40),   # sentence -> word
        'in':         _make_mask(ke3, n_sent, n_word, 56),   # word -> sentence
        'has':        _make_mask(ke4, n_word, n_sent, 40),   # sentence -> word
    }

    model = RelHetGraphPallas(hidden, out_size, heads, sent_in, word_in, key=kp)
    out = model.forward(masks, sentence_feat, word_feat)
    out = jax.block_until_ready(out)
    assert out.shape == (n_sent, out_size)
    assert bool(jnp.all(jnp.isfinite(out)))
    print("KERNEL_OK")
</pallas_src>

<mosaic_0001>
module attributes {stable_mosaic.version = 11 : i64} {
  func.func @_dual_linear_relu_kernel(%arg0: i32, %arg1: memref<16x128xf32, #tpu.memory_space<vmem>>, %arg2: memref<128x128xbf16, #tpu.memory_space<vmem>>, %arg3: memref<1x128xf32, #tpu.memory_space<vmem>>, %arg4: memref<24x128xf32, #tpu.memory_space<vmem>>, %arg5: memref<128x128xbf16, #tpu.memory_space<vmem>>, %arg6: memref<1x128xf32, #tpu.memory_space<vmem>>, %arg7: memref<16x128xf32, #tpu.memory_space<vmem>>, %arg8: memref<24x128xf32, #tpu.memory_space<vmem>>) attributes {dimension_semantics = [#tpu.dimension_semantics<arbitrary>], iteration_bounds = array<i64: 1>, scalar_prefetch = 0 : i64, scratch_operands = 0 : i64, tpu.core_type = #tpu.core_type<tc>, window_params = [{pipeline_mode = #tpu.pipeline_mode<synchronous>, transform_indices = @transform_0, window_bounds = array<i64: 16, 128>}, {pipeline_mode = #tpu.pipeline_mode<synchronous>, transform_indices = @transform_1, window_bounds = array<i64: 128, 128>}, {pipeline_mode = #tpu.pipeline_mode<synchronous>, transform_indices = @transform_2, window_bounds = array<i64: 1, 128>}, {pipeline_mode = #tpu.pipeline_mode<synchronous>, transform_indices = @transform_3, window_bounds = array<i64: 24, 128>}, {pipeline_mode = #tpu.pipeline_mode<synchronous>, transform_indices = @transform_4, window_bounds = array<i64: 128, 128>}, {pipeline_mode = #tpu.pipeline_mode<synchronous>, transform_indices = @transform_5, window_bounds = array<i64: 1, 128>}, {pipeline_mode = #tpu.pipeline_mode<synchronous>, transform_indices = @transform_6, window_bounds = array<i64: 16, 128>}, {pipeline_mode = #tpu.pipeline_mode<synchronous>, transform_indices = @transform_7, window_bounds = array<i64: 24, 128>}]} {
    %c0 = arith.constant 0 : index
    %c0_0 = arith.constant 0 : index
    %0 = vector.load %arg1[%c0, %c0_0] : memref<16x128xf32, #tpu.memory_space<vmem>>, vector<16x128xf32>
    %1 = arith.truncf %0 : vector<16x128xf32> to vector<16x128xbf16>
    %c0_1 = arith.constant 0 : index
    %c0_2 = arith.constant 0 : index
    %2 = vector.load %arg2[%c0_1, %c0_2] : memref<128x128xbf16, #tpu.memory_space<vmem>>, vector<128x128xbf16>
    %cst = arith.constant dense<0.000000e+00> : vector<16x128xf32>
    %3 = tpu.matmul %1, %2, %cst {dimension_numbers = #tpu.dot_dimension_numbers<[1], [0], [0], [1], [0, 0, 1, 1], [], []>} : vector<16x128xbf16>, vector<128x128xbf16>, vector<16x128xf32> -> vector<16x128xf32>
    %c0_3 = arith.constant 0 : index
    %c0_4 = arith.constant 0 : index
    %4 = vector.load %arg3[%c0_3, %c0_4] : memref<1x128xf32, #tpu.memory_space<vmem>>, vector<1x128xf32>
    %5 = vector.broadcast %4 : vector<1x128xf32> to vector<16x128xf32>
    %6 = arith.addf %3, %5 : vector<16x128xf32>
    %cst_5 = arith.constant 0.000000e+00 : f32
    %7 = vector.broadcast %cst_5 : f32 to vector<16x128xf32>
    %8 = arith.maximumf %6, %7 : vector<16x128xf32>
    %c0_6 = arith.constant 0 : index
    %c0_7 = arith.constant 0 : index
    %9 = vector.load %arg7[%c0_6, %c0_7] : memref<16x128xf32, #tpu.memory_space<vmem>>, vector<16x128xf32>
    tpu.vector_store %arg7[%c0_6, %c0_7], %8 {strides = array<i32>} : memref<16x128xf32, #tpu.memory_space<vmem>>, vector<16x128xf32>,
    %c0_8 = arith.constant 0 : index
    %c0_9 = arith.constant 0 : index
    %10 = vector.load %arg4[%c0_8, %c0_9] : memref<24x128xf32, #tpu.memory_space<vmem>>, vector<24x128xf32>
    %11 = arith.truncf %10 : vector<24x128xf32> to vector<24x128xbf16>
    %c0_10 = arith.constant 0 : index
    %c0_11 = arith.constant 0 : index
    %12 = vector.load %arg5[%c0_10, %c0_11] : memref<128x128xbf16, #tpu.memory_space<vmem>>, vector<128x128xbf16>
    %cst_12 = arith.constant dense<0.000000e+00> : vector<24x128xf32>
    %13 = tpu.matmul %11, %12, %cst_12 {dimension_numbers = #tpu.dot_dimension_numbers<[1], [0], [0], [1], [0, 0, 1, 1], [], []>} : vector<24x128xbf16>, vector<128x128xbf16>, vector<24x128xf32> -> vector<24x128xf32>
    %c0_13 = arith.constant 0 : index
    %c0_14 = arith.constant 0 : index
    %14 = vector.load %arg6[%c0_13, %c0_14] : memref<1x128xf32, #tpu.memory_space<vmem>>, vector<1x128xf32>
    %15 = vector.broadcast %14 : vector<1x128xf32> to vector<24x128xf32>
    %16 = arith.addf %13, %15 : vector<24x128xf32>
    %cst_15 = arith.constant 0.000000e+00 : f32
    %17 = vector.broadcast %cst_15 : f32 to vector<24x128xf32>
    %18 = arith.maximumf %16, %17 : vector<24x128xf32>
    %c0_16 = arith.constant 0 : index
    %c0_17 = arith.constant 0 : index
    %19 = vector.load %arg8[%c0_16, %c0_17] : memref<24x128xf32, #tpu.memory_space<vmem>>, vector<24x128xf32>
    tpu.vector_store %arg8[%c0_16, %c0_17], %18 {strides = array<i32>} : memref<24x128xf32, #tpu.memory_space<vmem>>, vector<24x128xf32>,
    return
  }
  func.func @transform_0(%arg0: i32) -> (i32, i32) {
    %c0_i32 = arith.constant 0 : i32
    %c0_i32_0 = arith.constant 0 : i32
    %c0_i32_1 = arith.constant 0 : i32
    return %c0_i32, %c0_i32_0 : i32, i32
  }
  func.func @transform_1(%arg0: i32) -> (i32, i32) {
    %c0_i32 = arith.constant 0 : i32
    %c0_i32_0 = arith.constant 0 : i32
    %c0_i32_1 = arith.constant 0 : i32
    return %c0_i32, %c0_i32_0 : i32, i32
  }
  func.func @transform_2(%arg0: i32) -> (i32, i32) {
    %c0_i32 = arith.constant 0 : i32
    %c0_i32_0 = arith.constant 0 : i32
    %c0_i32_1 = arith.constant 0 : i32
    return %c0_i32, %c0_i32_0 : i32, i32
  }
  func.func @transform_3(%arg0: i32) -> (i32, i32) {
    %c0_i32 = arith.constant 0 : i32
    %c0_i32_0 = arith.constant 0 : i32
    %c0_i32_1 = arith.constant 0 : i32
    return %c0_i32, %c0_i32_0 : i32, i32
  }
  func.func @transform_4(%arg0: i32) -> (i32, i32) {
    %c0_i32 = arith.constant 0 : i32
    %c0_i32_0 = arith.constant 0 : i32
    %c0_i32_1 = arith.constant 0 : i32
    return %c0_i32, %c0_i32_0 : i32, i32
  }
  func.func @transform_5(%arg0: i32) -> (i32, i32) {
    %c0_i32 = arith.constant 0 : i32
    %c0_i32_0 = arith.constant 0 : i32
    %c0_i32_1 = arith.constant 0 : i32
    return %c0_i32, %c0_i32_0 : i32, i32
  }
  func.func @transform_6(%arg0: i32) -> (i32, i32) {
    %c0_i32 = arith.constant 0 : i32
    %c0_i32_0 = arith.constant 0 : i32
    %c0_i32_1 = arith.constant 0 : i32
    return %c0_i32, %c0_i32_0 : i32, i32
  }
  func.func @transform_7(%arg0: i32) -> (i32, i32) {
    %c0_i32 = arith.constant 0 : i32
    %c0_i32_0 = arith.constant 0 : i32
    %c0_i32_1 = arith.constant 0 : i32
    return %c0_i32, %c0_i32_0 : i32, i32
  }
}

</mosaic_0001>

<bundles_post_ra>
// kernel: tpu_custom_call.1
= control target key start
LH: loop header
LB: loop body
LE: loop exit
PB: predicated region body
PF: predicated region fallthrough
CT: control target
= control target key end

     0   :  { %13 = vsyncpa [#allocation3], 0  ;;  %s696_s0 = inlined_call_operand.hbm [shape: f32[16,128], index: 0, kind: input, shape index: {}]   ;;  %s697_s1 = inlined_call_operand.hbm [shape: bf16[128,128], index: 1, kind: input, shape index: {}]   ;;  %s698_s2 = inlined_call_operand.vmem [shape: f32[1,128], index: 2, kind: input, shape index: {}]   ;;  %s699_s3 = inlined_call_operand.hbm [shape: f32[24,128], index: 3, kind: input, shape index: {}]   ;;  %s700_s4 = inlined_call_operand.hbm [shape: bf16[128,128], index: 4, kind: input, shape index: {}]   ;;  %s701_s5 = inlined_call_operand.vmem [shape: f32[1,128], index: 5, kind: input, shape index: {}]   ;;  %s702_s6 = inlined_call_operand.hbm [shape: f32[16,128], index: 6, kind: output, shape index: {0}]   ;;  %s703_s7 = inlined_call_operand.hbm [shape: f32[24,128], index: 7, kind: output, shape index: {1}]  }
   0x1   :  { %14 = vsyncpa [#allocation6], 0 }
   0x2   :  { %15 = vsyncpa [#allocation9], 0 }
   0x3   :  { %16 = vsyncpa [#allocation4], 0 }
   0x4   :  { %17 = vsyncpa [#allocation12], 0  ;;  %s602_s24 = smov [#allocation5]  }
   0x5   :  { %s35_s25 = sshll.u32 %s602_s24, 4  ;;  %s36_s25 = int_to_ptr.vmem [resolvable:$true] %s35_s25 }
   0x6   :  { %s480_s26 = scalar_lea.vmem %s36_s25, 1024  ;;  %p485_p1 = scmp.lt.s32.totalorder %s36_s25, %s36_s25 }
   0x7   :  { %p481_p0 = scmp.ne.s32.totalorder %s36_s25, %s480_s26  ;;  %p486_p2 = scmp.lt.s32.totalorder %s480_s26, %s480_s26 }
   0x9   :  { %p487_p3 = por %p486_p2, %p485_p1 }
   0xb   :  { %p488_p4 = pnand %p487_p3, %p481_p0 }
   0xd   :  { %491 = shalt.err (!%p488_p4)
}
   0xe   :  { %s603_s27 = smov 64   ;;  %s604_s28 = smov 4  }
   0xf   :  { %41 = dma.hbm_to_vmem [thread:$0]  %s697_s1, 1024, %s36_s25, [#allocation6], %s603_s27, %s603_s27, %s604_s28  }
  0x10   :  { %s605_s8 = smov [#allocation2]  }
  0x11   :  { %s23_s9 = sshll.u32 %s605_s8, 4  ;;  %s24_s9 = int_to_ptr.vmem [resolvable:$true] %s23_s9 }
  0x12   :  { %s500_s10 = scalar_lea.vmem %s24_s9, 256  ;;  %p505_p6 = scmp.lt.s32.totalorder %s24_s9, %s24_s9 }
  0x13   :  { %p501_p5 = scmp.ne.s32.totalorder %s24_s9, %s500_s10  ;;  %p506_p7 = scmp.lt.s32.totalorder %s500_s10, %s500_s10 }
  0x15   :  { %p507_p8 = por %p506_p7, %p505_p6 }
  0x17   :  { %p508_p9 = pnand %p507_p8, %p501_p5 }
  0x19   :  { %511 = shalt.err (!%p508_p9)
}
  0x1a   :  { %s606_s11 = smov 128   ;;  %s607_s12 = smov 8  }
  0x1b   :  { %29 = dma.hbm_to_vmem [thread:$0]  %s696_s0, 256, %s24_s9, [#allocation3], %s606_s11, %s606_s11, %s607_s12  }
  0x1c   :  { %s608_s1 = smov [#allocation7]   ;;  %s609_s16 = smov [#allocation8]  }
  0x1d   :  { %s49_s15 = sshll.u32 %s608_s1, 4  ;;  %s61_s17 = sshll.u32 %s609_s16, 4  ;;  %s50_s15 = int_to_ptr.vmem [resolvable:$true] %s49_s15  ;;  %s62_s17 = int_to_ptr.vmem [resolvable:$true] %s61_s17 }
  0x1e   :  { %s520_s18 = scalar_lea.vmem %s50_s15, 384  ;;  %p525_p11 = scmp.lt.s32.totalorder %s50_s15, %s50_s15 }
  0x1f   :  { %p521_p10 = scmp.ne.s32.totalorder %s50_s15, %s520_s18  ;;  %p526_p12 = scmp.lt.s32.totalorder %s520_s18, %s520_s18 }
  0x21   :  { %p527_p13 = por %p526_p12, %p525_p11 }
  0x23   :  { %p528_p0 = pnand %p527_p13, %p521_p10 }
  0x25   :  { %531 = shalt.err (!%p528_p0)
}
  0x26   :  { %55 = dma.hbm_to_vmem [thread:$0]  %s699_s3, 384, %s50_s15, [#allocation6], %s606_s11, %s606_s11, %s607_s12  }
  0x27   :  { %s540_s0 = scalar_lea.vmem %s62_s17, 1024  ;;  %p545_p2 = scmp.lt.s32.totalorder %s62_s17, %s62_s17 }
  0x28   :  { %p541_p1 = scmp.ne.s32.totalorder %s62_s17, %s540_s0  ;;  %p546_p3 = scmp.lt.s32.totalorder %s540_s0, %s540_s0 }
  0x2a   :  { %p547_p4 = por %p546_p3, %p545_p2 }
  0x2c   :  { %p548_p5 = pnand %p547_p4, %p541_p1 }
  0x2e   :  { %551 = shalt.err (!%p548_p5)
}
  0x2f   :  { %67 = dma.hbm_to_vmem [thread:$0]  %s700_s4, 1024, %s62_s17, [#allocation9], %s603_s27, %s603_s27, %s604_s28  }
  0x30   :  { %592 = dma.done.wait [#allocation3], 256  }
  0x31   :  { %593 = vsyncadd [#allocation3], 4294967040 }
  0x32   :  { %594 = dma.done.wait [#allocation6], 1408  }
  0x33   :  { %595 = vsyncadd [#allocation6], 4294965888 }
  0x34   :  { %596 = dma.done.wait [#allocation9], 1024  }
  0x35   :  { %597 = vsyncadd [#allocation9], 4294966272  ;;  %v610_v0 = vmov 0.0   ;;  %vm611_vm0 = vmmov 0   ;;  %v456_v1 = vld [vmem:[#allocation5 + $0x38] sm:$0xff]   ;;  %v457_v2 = vld [vmem:[#allocation8 + $0x38] sm:$0xff]  }
  0x36   :  { %404 = vmatprep.subr.bf16.mxu0 %v610_v0  ;;  %420 = vmatprep.mubr.msk.bf16.mxu0 %vm611_vm0, %v610_v0  ;;  %v458_v3 = vld [vmem:[#allocation5 + $0x30] sm:$0xff]   ;;  %v459_v4 = vld [vmem:[#allocation8 + $0x30] sm:$0xff]   ;;  %v461_v5 = vld [vmem:[#allocation8 + $0x28] sm:$0xff]   ;;  %s612_s25 = smov [#allocation10]  }
  0x37   :  { %405 = vmatpush3.bf16.msra.mxu0 %v456_v1  ;;  %424 = vmatprep.subr.bf16.mxu1 %v457_v2  ;;  %v460_v6 = vld [vmem:[#allocation5 + $0x28] sm:$0xff]   ;;  %v463_v7 = vld [vmem:[#allocation8 + $0x20] sm:$0xff]   ;;  %v462_v8 = vld [vmem:[#allocation5 + $0x20] sm:$0xff]   ;;  %s337_s26 = sshll.u32 %s612_s25, 4  ;;  %s338_s26 = int_to_ptr.vmem [resolvable:$true] %s337_s26 }
  0x38   :  { %406 = vmatprep.subr.bf16.mxu0 %v610_v0  ;;  %425 = vmatpush3.bf16.msra.mxu1 %v457_v2  ;;  %v465_v9 = vld [vmem:[#allocation8 + $0x18] sm:$0xff]   ;;  %v464_v10 = vld [vmem:[#allocation5 + $0x18] sm:$0xff]   ;;  %v202_v11 = vld [vmem:[#allocation7] sm:$0xff]  ;;  %s552_s27 = scalar_lea.vmem %s338_s26, 256  ;;  %p557_p7 = scmp.lt.s32.totalorder %s338_s26, %s338_s26 }
  0x39   :  { %426 = vmatprep.subr.bf16.mxu1 %v459_v4  ;;  %v467_v12 = vld [vmem:[#allocation8 + $0x10] sm:$0xff]   ;;  %v466_v14 = vld [vmem:[#allocation5 + $0x10] sm:$0xff]   ;;  %v469_v16 = vld [vmem:[#allocation8 + $0x8] sm:$0xff]   ;;  %p553_p6 = scmp.ne.s32.totalorder %s338_s26, %s552_s27  ;;  %p558_p8 = scmp.lt.s32.totalorder %s552_s27, %s552_s27 }
  0x3a   :  { %v203_v13 = vld [vmem:[#allocation7 + $0x8] sm:$0xff]  ;;  %v471_v18 = vld [vmem:[#allocation8] sm:$0xff]   ;;  %v470_v19 = vld [vmem:[#allocation5] sm:$0xff]  }
  0x3b   :  { %407 = vmatpush3.bf16.msra.mxu0 %v458_v3  ;;  %v205_v15 = vpack.c.bf16 %v203_v13, %v202_v11  ;;  %v468_v17 = vld [vmem:[#allocation5 + $0x8] sm:$0xff]   ;;  %v83_v20 = vld [vmem:[#allocation2] sm:$0xff]  ;;  %v84_v21 = vld [vmem:[#allocation2 + $0x8] sm:$0xff]  ;;  %p559_p9 = por %p558_p8, %p557_p7 }
  0x3c   :  { %408 = vmatprep.subr.bf16.mxu0 %v610_v0  ;;  %427 = vmatpush3.bf16.msra.mxu1 %v459_v4  ;;  %v204_v22 = vld [vmem:[#allocation7 + $0x10] sm:$0xff]  ;;  %v85_v23 = vpack.c.bf16 %v84_v21, %v83_v20 }
  0x3d   :  { %428 = vmatprep.subr.bf16.mxu1 %v461_v5  ;;  %440 = vmatprep.mubr.bf16.mxu1 %v205_v15  ;;  %v206_v24 = vpack.c.bf16 %v204_v22, %v204_v22  ;;  %v367_v25 = vld [vmem:[%s698_s2] ss:$0 sm:$0xff]  ;;  %s613_s2 = smov [#allocation11]   ;;  %p560_p10 = pnand %p559_p9, %p553_p6 }
  0x3e   :  { %v376_v27 = vld [vmem:[%s701_s5] ss:$0 sm:$0xff]  ;;  %s349_s5 = sshll.u32 %s613_s2, 4  ;;  %s350_s5 = int_to_ptr.vmem [resolvable:$true] %s349_s5 }
  0x3f   :  { %409 = vmatpush3.bf16.msra.mxu0 %v460_v6 }
  0x40   :  { %410 = vmatprep.subr.bf16.mxu0 %v610_v0  ;;  %429 = vmatpush3.bf16.msra.mxu1 %v461_v5 }
  0x41   :  { %430 = vmatprep.subr.bf16.mxu1 %v463_v7 }
  0x43   :  { %411 = vmatpush3.bf16.msra.mxu0 %v462_v8 }
  0x44   :  { %412 = vmatprep.subr.bf16.mxu0 %v610_v0  ;;  %431 = vmatpush3.bf16.msra.mxu1 %v463_v7 }
  0x45   :  { %432 = vmatprep.subr.bf16.mxu1 %v465_v9 }
  0x47   :  { %413 = vmatpush3.bf16.msra.mxu0 %v464_v10 }
  0x48   :  { %414 = vmatprep.subr.bf16.mxu0 %v610_v0  ;;  %433 = vmatpush3.bf16.msra.mxu1 %v465_v9 }
  0x49   :  { %434 = vmatprep.subr.bf16.mxu1 %v467_v12 }
  0x4b   :  { %415 = vmatpush3.bf16.msra.mxu0 %v466_v14 }
  0x4c   :  { %416 = vmatprep.subr.bf16.mxu0 %v610_v0  ;;  %435 = vmatpush3.bf16.msra.mxu1 %v467_v12 }
  0x4d   :  { %436 = vmatprep.subr.bf16.mxu1 %v469_v16 }
  0x4f   :  { %417 = vmatpush3.bf16.msra.mxu0 %v468_v17 }
  0x50   :  { %418 = vmatprep.subr.bf16.mxu0 %v610_v0  ;;  %437 = vmatpush3.bf16.msra.mxu1 %v469_v16 }
  0x51   :  { %438 = vmatprep.subr.bf16.mxu1 %v471_v18 }
  0x53   :  { %419 = vmatpush3.bf16.msra.mxu0 %v470_v19 }
  0x54   :  { %439 = vmatpush3.bf16.msra.mxu1 %v471_v18 }
  0x56   :  { %421 = vmatmul.mubr.bf16.vlgmr.msra.gmra.mxu0 %v85_v23 }
  0x57   :  { %441 = vmatmul.mubr.bf16.vlgmr.msra.gmra.mxu1 %v206_v24 }
 0x116   :  { %v191_v26 = vpop.f32.mrf.mxu0 }
 0x117   :  { %v192_v28 = vadd.f32 %v367_v25, %v191_v26  ;;  %v442_v29 = vpop.f32.mrf.mxu1 }
 0x118   :  { %v422_v30 = vpop.f32.mrf.mxu0  ;;  %v321_v32 = vadd.f32 %v442_v29, %v376_v27 }
 0x119   :  { %v198_v31 = vmax.f32 %v192_v28, 0.0  ;;  %v312_v33 = vpop.f32.mrf.mxu1 }
 0x11a   :  { %v194_v34 = vpop.f32.mrf.mxu0  ;;  %v328_v35 = vmax.f32 %v321_v32, 0.0  ;;  %v313_v36 = vadd.f32 %v376_v27, %v312_v33 }
 0x11b   :  { %200 = vst [vmem:[#allocation10] sm:$0xff] %v198_v31  ;;  %v195_v37 = vadd.f32 %v367_v25, %v194_v34  ;;  %v443_v38 = vpop.f32.mrf.mxu1 }
 0x11c   :  { %v423_v39 = vpop.f32.mrf.mxu0  ;;  %331 = vst [vmem:[#allocation11 + $0x10] sm:$0xff] %v328_v35  ;;  %v326_v40 = vmax.f32 %v313_v36, 0.0 }
 0x11d   :  { %v199_v41 = vmax.f32 %v195_v37, 0.0  ;;  %v315_v42 = vpop.f32.mrf.mxu1 }
 0x11e   :  { %329 = vst [vmem:[#allocation11] sm:$0xff] %v326_v40  ;;  %v316_v43 = vadd.f32 %v376_v27, %v315_v42 }
 0x11f   :  { %201 = vst [vmem:[#allocation10 + $0x8] sm:$0xff] %v199_v41 }
 0x120   :  { %563 = shalt.err (!%p560_p10)
}
 0x121   :  { %343 = dma.vmem_to_hbm [thread:$0]  %s338_s26, 256, %s702_s6, [#allocation4], %s606_s11, %s606_s11, %s607_s12   ;;  %v327_v44 = vmax.f32 %v316_v43, 0.0 }
 0x122   :  { %s572_s30 = scalar_lea.vmem %s350_s5, 384  ;;  %p577_p12 = scmp.lt.s32.totalorder %s350_s5, %s350_s5 }
 0x123   :  { %330 = vst [vmem:[#allocation11 + $0x8] sm:$0xff] %v327_v44  ;;  %p573_p11 = scmp.ne.s32.totalorder %s350_s5, %s572_s30  ;;  %p578_p13 = scmp.lt.s32.totalorder %s572_s30, %s572_s30 }
 0x125   :  { %p579_p0 = por %p578_p13, %p577_p12 }
 0x127   :  { %p580_p1 = pnand %p579_p0, %p573_p11 }
 0x129   :  { %583 = shalt.err (!%p580_p1)
}
 0x12a   :  { %355 = dma.vmem_to_hbm [thread:$0]  %s350_s5, 384, %s703_s7, [#allocation12], %s606_s11, %s606_s11, %s607_s12  }
 0x12b   :  { %598 = dma.done.wait [#allocation4], 256  }
 0x12c   :  { %599 = vsyncadd [#allocation4], 4294967040 }
 0x12d   :  { %600 = dma.done.wait [#allocation12], 384  }
 0x12e   :  { %601 = vsyncadd [#allocation12], 4294966912 }
 0x12f   :  { %362 = vsyncpa [#allocation3], 1 }
 0x130   :  { %363 = vsyncpa [#allocation6], 1 }
 0x131   :  { %364 = vsyncpa [#allocation9], 1 }
 0x132   :  { %365 = vsyncpa [#allocation4], 1 }
 0x133   :  { %366 = vsyncpa [#allocation12], 1 }

</bundles_post_ra>
